<compile_context>
chip_gen: v7x
topology: tpu7x:2x2x1
jax: 0.10.0
libtpu: 0.0.40
codegen_flags: <defaults>
</compile_context>

<pallas_src>
import functools

import jax
import jax.numpy as jnp
from jax import lax
from jax.experimental import pallas as pl
from jax.experimental.pallas import tpu as pltpu

LANE = 128


def _round_up(x, m):
    return ((x + m - 1) // m) * m


# ----------------------------- Pallas kernel --------------------------------
def _conv3x3_relu_kernel(x_ref, w_ref, b_ref, o_ref, *, TR, W, Wq, Cop):
    # x_ref: (1, 1, (TR+2)*Wq, Kp) bf16 — one row tile, rows flattened, kw taps folded into K.
    # w_ref: (3, Kp, Cop)          bf16 — constant block index -> resident across the grid.
    # b_ref: (1, Cop)              f32  — resident.
    # o_ref: (1, TR, W, Cop)       bf16 — lane-dense output channels.
    rows = TR * Wq
    # Tap kh reads the input shifted down by kh image rows == kh*Wq flat rows.  Wq is a
    # multiple of 16, so each slice below is (16,128)-tile aligned: it feeds the MXU
    # straight from VMEM with no relayout copy (review item #1).
    acc = jnp.dot(x_ref[0, 0, 0:rows, :], w_ref[0],
                  preferred_element_type=jnp.float32)       # init = first tap (no zeros fill)
    for kh in (1, 2):
        acc = acc + jnp.dot(x_ref[0, 0, kh * Wq:kh * Wq + rows, :], w_ref[kh],
                            preferred_element_type=jnp.float32)
    out = jnp.maximum(acc + b_ref[...], 0.0)                 # bias + ReLU in f32
    out = out.reshape(TR, Wq, Cop)[:, :W, :]                 # drop width padding
    o_ref[...] = out[None].astype(o_ref.dtype)               # bf16 store


# ------------------------- block(x): conv3x3 + relu --------------------------
def conv3x3_relu(x_nchw, weight, bias, *, row_tile=64):
    """Conv2d(C, Co, 3, padding=1) + ReLU.  x: (N,C,H,W), weight: (Co,C,3,3), bias: (Co,)."""
    N, C, H, W = x_nchw.shape
    Co = weight.shape[0]

    TR = row_tile if H % row_tile == 0 else H   # TODO(synk): support a ragged last row tile.
    T = H // TR
    Wq = _round_up(W, 16)                       # flat row stride; mult of 16 -> bf16-tile-aligned shifts
    K = 3 * C                                   # kw taps folded into the contraction axis
    Kp = _round_up(K, LANE)
    Cop = _round_up(Co, LANE)

    # ---- prologue: cast to bf16 FIRST, then layout (halves pad/transpose HBM traffic) ----
    xb = jnp.transpose(x_nchw.astype(jnp.bfloat16), (0, 2, 3, 1))      # NHWC bf16
    xp = jnp.pad(xb, ((0, 0), (1, 1), (1, 1), (0, 0)))                 # +1 spatial halo (zeros)
    # Fold the 3 kw taps into channels: xk[n,h,w, kw*C+c] = xp[n,h,w+kw,c]  -> (N, H+2, W, 3C)
    xk = jnp.concatenate([xp[:, :, kw:kw + W, :] for kw in range(3)], axis=-1)
    xk = jnp.pad(xk, ((0, 0), (0, 0), (0, Wq - W), (0, Kp - K)))       # width + K lane padding
    # Row tiles with a 2-row halo each, rows flattened per tile: (N, T, (TR+2)*Wq, Kp)
    xt = jnp.concatenate([xk[:, None, t * TR:t * TR + TR + 2] for t in range(T)], axis=1)
    xt = xt.reshape(N, T, (TR + 2) * Wq, Kp)

    # Weights (Co, C, 3, 3) -> w3[kh, kw*C+c, co], zero-padded to (3, Kp, Cop), bf16.
    w3 = jnp.transpose(weight, (2, 3, 1, 0)).reshape(3, K, Co)
    w3 = jnp.pad(w3, ((0, 0), (0, Kp - K), (0, Cop - Co))).astype(jnp.bfloat16)
    b2 = jnp.pad(bias, (0, Cop - Co)).reshape(1, Cop).astype(jnp.float32)

    kern = functools.partial(_conv3x3_relu_kernel, TR=TR, W=W, Wq=Wq, Cop=Cop)

    # VMEM budget derived from actual blocks (double-buffered x/o, resident w/b, f32 acc
    # headroom), capped below v7x's 64 MiB physical VMEM (v5e/v6e have 128 MiB).
    x_blk = (TR + 2) * Wq * Kp * 2
    o_blk = TR * W * Cop * 2
    acc_b = TR * Wq * Cop * 4
    vmem_est = 2 * (x_blk + o_blk) + w3.size * 2 + b2.size * 4 + 2 * acc_b
    vmem_limit = int(min(56 * 2**20, max(32 * 2**20, 2 * vmem_est)))

    flops = 2 * N * T * 3 * (TR * Wq) * Kp * Cop
    bytes_accessed = xt.size * 2 + w3.size * 2 + b2.size * 4 + N * H * W * Cop * 2

    y = pl.pallas_call(
        kern,
        out_shape=jax.ShapeDtypeStruct((N, H, W, Cop), jnp.bfloat16),   # bf16 output (review)
        grid_spec=pltpu.PrefetchScalarGridSpec(
            num_scalar_prefetch=0,
            grid=(N, T),
            in_specs=[
                # one row tile (with halo) per grid step, pipelined over (image, tile)
                pl.BlockSpec((1, 1, (TR + 2) * Wq, Kp), lambda n, t: (n, t, 0, 0)),
                # weights / bias: same block every step -> fetched once, stay resident
                pl.BlockSpec((3, Kp, Cop), lambda n, t: (0, 0, 0)),
                pl.BlockSpec((1, Cop), lambda n, t: (0, 0)),
            ],
            out_specs=pl.BlockSpec((1, TR, W, Cop), lambda n, t: (n, t, 0, 0)),
        ),
        compiler_params=pltpu.CompilerParams(
            dimension_semantics=("parallel", "parallel"),   # both axes disjoint -> 2 TCs on v7x
            vmem_limit_bytes=vmem_limit,
        ),
        cost_estimate=pl.CostEstimate(
            flops=flops, transcendentals=0, bytes_accessed=bytes_accessed),
    )(xt, w3, b2)

    # Channel un-pad and NHWC->NCHW on the bf16 output; f32 upcast is the last op.
    y = y[..., :Co]
    return jnp.transpose(y, (0, 3, 1, 2)).astype(jnp.float32)


# --------------------------- StochasticBlock ---------------------------------
def stochastic_block(x, weight, bias, *, drop_prob=0.2, training=False, key=None,
                     row_tile=64):
    """Matches the PyTorch module literally (no 1/(1-p) rescale):
        if training and rand() < drop_prob: return x
        else: return block(x)
    """
    if not training:
        return conv3x3_relu(x, weight, bias, row_tile=row_tile)
    if key is None:
        raise ValueError("training=True requires a PRNG key for the stochastic skip")
    u = jax.random.uniform(key, ())
    return lax.cond(
        u < drop_prob,
        lambda x_: x_,
        lambda x_: conv3x3_relu(x_, weight, bias, row_tile=row_tile),
        x,
    )


# --------------------------------- main --------------------------------------
if __name__ == "__main__":
    key = jax.random.PRNGKey(0)
    k_x, k_w, k_b, k_drop = jax.random.split(key, 4)

    N, C, H, W = 2, 4, 16, 16
    x = jax.random.normal(k_x, (N, C, H, W), dtype=jnp.float32)

    # Deterministic parameter init (Conv2d(C, C, 3, padding=1)).
    fan_in = C * 3 * 3
    bound = 1.0 / jnp.sqrt(fan_in)
    weight = jax.random.uniform(k_w, (C, C, 3, 3), minval=-bound, maxval=bound,
                                dtype=jnp.float32)
    bias = jax.random.uniform(k_b, (C,), minval=-bound, maxval=bound,
                              dtype=jnp.float32)

    # Eval mode: block is always applied.  row_tile=8 -> 2 row tiles, exercising the
    # halo / row-tiling path on the 16x16 demo input.
    y = stochastic_block(x, weight, bias, drop_prob=0.2, training=False, row_tile=8)
    y = jax.block_until_ready(y)
    assert y.shape == (N, C, H, W)

    # Reference: same bf16-rounded operands, f32 accumulation, via XLA conv.
    xb = x.astype(jnp.bfloat16).astype(jnp.float32)
    wb = weight.astype(jnp.bfloat16).astype(jnp.float32)
    ref = lax.conv_general_dilated(
        xb, wb, window_strides=(1, 1), padding="SAME",
        dimension_numbers=("NCHW", "OIHW", "NCHW"))
    ref = jnp.maximum(ref + bias[None, :, None, None], 0.0)
    # Kernel output is bf16 (perf review) -> compare at bf16 resolution.
    assert jnp.allclose(y, ref, atol=3e-2, rtol=3e-2), "mismatch vs reference"

    # Training mode: stochastic skip (coin flip from a JAX key; PyTorch uses the host
    # RNG — semantics are equivalent).
    y_train = stochastic_block(x, weight, bias, drop_prob=0.2, training=True,
                               key=k_drop, row_tile=8)
    jax.block_until_ready(y_train)

    print("KERNEL_OK")
</pallas_src>

<mosaic_0001>
module attributes {stable_mosaic.version = 11 : i64} {
  func.func @_conv3x3_relu_kernel(%arg0: i32, %arg1: i32, %arg2: memref<1x1x160x128xbf16, #tpu.memory_space<vmem>>, %arg3: memref<3x128x128xbf16, #tpu.memory_space<vmem>>, %arg4: memref<1x128xf32, #tpu.memory_space<vmem>>, %arg5: memref<1x8x16x128xbf16, #tpu.memory_space<vmem>>) attributes {dimension_semantics = [#tpu.dimension_semantics<parallel>, #tpu.dimension_semantics<parallel>], iteration_bounds = array<i64: 2, 2>, scalar_prefetch = 0 : i64, scratch_operands = 0 : i64, tpu.core_type = #tpu.core_type<tc>, window_params = [{transform_indices = @transform_0, window_bounds = array<i64: 1, 1, 160, 128>}, {pipeline_mode = #tpu.pipeline_mode<synchronous>, transform_indices = @transform_1, window_bounds = array<i64: 3, 128, 128>}, {pipeline_mode = #tpu.pipeline_mode<synchronous>, transform_indices = @transform_2, window_bounds = array<i64: 1, 128>}, {transform_indices = @transform_3, window_bounds = array<i64: 1, 8, 16, 128>}]} {
    %c0 = arith.constant 0 : index
    %c0_0 = arith.constant 0 : index
    %c0_1 = arith.constant 0 : index
    %c0_2 = arith.constant 0 : index
    %0 = vector.load %arg2[%c0, %c0_0, %c0_1, %c0_2] : memref<1x1x160x128xbf16, #tpu.memory_space<vmem>>, vector<1x1x128x128xbf16>
    %1 = vector.shape_cast %0 : vector<1x1x128x128xbf16> to vector<128x128xbf16>
    %c0_3 = arith.constant 0 : index
    %c0_4 = arith.constant 0 : index
    %c0_5 = arith.constant 0 : index
    %2 = vector.load %arg3[%c0_3, %c0_4, %c0_5] : memref<3x128x128xbf16, #tpu.memory_space<vmem>>, vector<1x128x128xbf16>
    %3 = vector.shape_cast %2 : vector<1x128x128xbf16> to vector<128x128xbf16>
    %cst = arith.constant dense<0.000000e+00> : vector<128x128xf32>
    %4 = tpu.matmul %1, %3, %cst {dimension_numbers = #tpu.dot_dimension_numbers<[1], [0], [0], [1], [0, 0, 1, 1], [], []>} : vector<128x128xbf16>, vector<128x128xbf16>, vector<128x128xf32> -> vector<128x128xf32>
    %c0_6 = arith.constant 0 : index
    %c0_7 = arith.constant 0 : index
    %c16 = arith.constant 16 : index
    %c0_8 = arith.constant 0 : index
    %5 = vector.load %arg2[%c0_6, %c0_7, %c16, %c0_8] : memref<1x1x160x128xbf16, #tpu.memory_space<vmem>>, vector<1x1x128x128xbf16>
    %6 = vector.shape_cast %5 : vector<1x1x128x128xbf16> to vector<128x128xbf16>
    %c1 = arith.constant 1 : index
    %c0_9 = arith.constant 0 : index
    %c0_10 = arith.constant 0 : index
    %7 = vector.load %arg3[%c1, %c0_9, %c0_10] : memref<3x128x128xbf16, #tpu.memory_space<vmem>>, vector<1x128x128xbf16>
    %8 = vector.shape_cast %7 : vector<1x128x128xbf16> to vector<128x128xbf16>
    %cst_11 = arith.constant dense<0.000000e+00> : vector<128x128xf32>
    %9 = tpu.matmul %6, %8, %cst_11 {dimension_numbers = #tpu.dot_dimension_numbers<[1], [0], [0], [1], [0, 0, 1, 1], [], []>} : vector<128x128xbf16>, vector<128x128xbf16>, vector<128x128xf32> -> vector<128x128xf32>
    %10 = arith.addf %4, %9 : vector<128x128xf32>
    %c0_12 = arith.constant 0 : index
    %c0_13 = arith.constant 0 : index
    %c32 = arith.constant 32 : index
    %c0_14 = arith.constant 0 : index
    %11 = vector.load %arg2[%c0_12, %c0_13, %c32, %c0_14] : memref<1x1x160x128xbf16, #tpu.memory_space<vmem>>, vector<1x1x128x128xbf16>
    %12 = vector.shape_cast %11 : vector<1x1x128x128xbf16> to vector<128x128xbf16>
    %c2 = arith.constant 2 : index
    %c0_15 = arith.constant 0 : index
    %c0_16 = arith.constant 0 : index
    %13 = vector.load %arg3[%c2, %c0_15, %c0_16] : memref<3x128x128xbf16, #tpu.memory_space<vmem>>, vector<1x128x128xbf16>
    %14 = vector.shape_cast %13 : vector<1x128x128xbf16> to vector<128x128xbf16>
    %cst_17 = arith.constant dense<0.000000e+00> : vector<128x128xf32>
    %15 = tpu.matmul %12, %14, %cst_17 {dimension_numbers = #tpu.dot_dimension_numbers<[1], [0], [0], [1], [0, 0, 1, 1], [], []>} : vector<128x128xbf16>, vector<128x128xbf16>, vector<128x128xf32> -> vector<128x128xf32>
    %16 = arith.addf %10, %15 : vector<128x128xf32>
    %c0_18 = arith.constant 0 : index
    %c0_19 = arith.constant 0 : index
    %17 = vector.load %arg4[%c0_18, %c0_19] : memref<1x128xf32, #tpu.memory_space<vmem>>, vector<1x128xf32>
    %18 = vector.broadcast %17 : vector<1x128xf32> to vector<128x128xf32>
    %19 = arith.addf %16, %18 : vector<128x128xf32>
    %cst_20 = arith.constant 0.000000e+00 : f32
    %20 = vector.broadcast %cst_20 : f32 to vector<128x128xf32>
    %21 = arith.maximumf %19, %20 : vector<128x128xf32>
    %22 = vector.shape_cast %21 : vector<128x128xf32> to vector<8x16x128xf32>
    %23 = vector.shape_cast %22 : vector<8x16x128xf32> to vector<1x8x16x128xf32>
    %24 = arith.truncf %23 : vector<1x8x16x128xf32> to vector<1x8x16x128xbf16>
    %c0_21 = arith.constant 0 : index
    %c0_22 = arith.constant 0 : index
    %c0_23 = arith.constant 0 : index
    %c0_24 = arith.constant 0 : index
    %25 = vector.load %arg5[%c0_21, %c0_22, %c0_23, %c0_24] : memref<1x8x16x128xbf16, #tpu.memory_space<vmem>>, vector<1x8x16x128xbf16>
    tpu.vector_store %arg5[%c0_21, %c0_22, %c0_23, %c0_24], %24 {strides = array<i32>} : memref<1x8x16x128xbf16, #tpu.memory_space<vmem>>, vector<1x8x16x128xbf16>,
    return
  }
  func.func @transform_0(%arg0: i32, %arg1: i32) -> (i32, i32, i32, i32) {
    %c0_i32 = arith.constant 0 : i32
    %c0_i32_0 = arith.constant 0 : i32
    %c0_i32_1 = arith.constant 0 : i32
    return %arg0, %arg1, %c0_i32, %c0_i32_0 : i32, i32, i32, i32
  }
  func.func @transform_1(%arg0: i32, %arg1: i32) -> (i32, i32, i32) {
    %c0_i32 = arith.constant 0 : i32
    %c0_i32_0 = arith.constant 0 : i32
    %c0_i32_1 = arith.constant 0 : i32
    %c0_i32_2 = arith.constant 0 : i32
    return %c0_i32, %c0_i32_0, %c0_i32_1 : i32, i32, i32
  }
  func.func @transform_2(%arg0: i32, %arg1: i32) -> (i32, i32) {
    %c0_i32 = arith.constant 0 : i32
    %c0_i32_0 = arith.constant 0 : i32
    %c0_i32_1 = arith.constant 0 : i32
    return %c0_i32, %c0_i32_0 : i32, i32
  }
  func.func @transform_3(%arg0: i32, %arg1: i32) -> (i32, i32, i32, i32) {
    %c0_i32 = arith.constant 0 : i32
    %c0_i32_0 = arith.constant 0 : i32
    %c0_i32_1 = arith.constant 0 : i32
    return %arg0, %arg1, %c0_i32, %c0_i32_0 : i32, i32, i32, i32
  }
}

</mosaic_0001>

<bundles_post_ra>
// kernel: tpu_custom_call.1
= control target key start
LH: loop header
LB: loop body
LE: loop exit
PB: predicated region body
PF: predicated region fallthrough
CT: control target
= control target key end

     0   :  { %s2059_s0 = inlined_call_operand.hbm [shape: bf16[2,2,160,128], index: 0, kind: input, shape index: {}]   ;;  %s2060_s1 = inlined_call_operand.hbm [shape: bf16[3,128,128], index: 1, kind: input, shape index: {}]   ;;  %s2061_s2 = inlined_call_operand.vmem [shape: f32[1,128], index: 2, kind: input, shape index: {}]   ;;  %s2062_s3 = inlined_call_operand.hbm [shape: bf16[2,16,16,128], index: 3, kind: output, shape index: {}]  }
   0x1   :  { %2072 = sst [smem:[#allocation14_spill]] %s2060_s1 }
   0x2   :  { %8 = vsyncpa [#allocation3], 0 }
   0x3   :  { %10 = vsyncpa [#allocation3 + $0x1], 0 }
   0x4   :  { %11 = vsyncpa [#allocation6], 0 }
   0x5   :  { %12 = vsyncpa [#allocation4], 0 }
   0x6   :  { %14 = vsyncpa [#allocation4 + $0x1], 0  ;;  %s1754_s12 = smov 0   ;;  %s1756_s13 = smov 0  }
   0x7   :  { %s1758_s14 = smov 0   ;;  %s1760_s15 = smov 0  }
   0x8   :  { %s1762_s16 = smov 0   ;;  %s1764_s17 = smov 0  }
   0x9   :  { %s1766_s18 = smov 0   ;;  %s1768_s19 = smov 0  }
   0xa LB: > { %2073 = sst [smem:[#allocation11_spill]] %s1717_s17  ;;  %s1097_s20 = sadd.s32 4294967295, %s1725_s19   ;;  %s1725_s19 = sphi %s1768_s19, %s20_s19   ;;  %s1721_s18 = sphi %s1766_s18, %s2099_s18   ;;  %s1717_s17 = sphi %s1764_s17, %s2093_s17   ;;  %s1713_s16 = sphi %s1762_s16, %s2098_s16   ;;  %s1709_s15 = sphi %s1760_s15, %s2092_s15   ;;  %s1705_s14 = sphi %s1758_s14, %s2097_s14   ;;  %s1701_s13 = sphi %s1756_s13, %s2096_s13   ;;  %s1697_s12 = sphi %s1754_s12, %s2095_s12  }
   0xb   : > { %s1098_s21 = sadd.s32 4294967294, %s1725_s19   ;;  %p54_p0 = scmp.ne.s32.totalorder %s1701_s13, %s1697_s12 }
   0xc   : > { %p1798_p1 = scmp.eq.s32.totalorder %s1097_s20, 0  ;;  %p1802_p2 = scmp.eq.s32.totalorder %s1097_s20, 3 }
   0xd   : > { %p128_p3 = scmp.eq.s32.totalorder %s1098_s21, 3  ;;  %p1099_p5 = scmp.ge.s32.totalorder %s1725_s19, 1 }
   0xe   : > { %s2074_s22 = scalar_select %p1798_p1, 1, 0 }
   0xf   : > { %s2075_s23 = scalar_select %p1802_p2, 1, 0 }
  0x10   : > { %p1808_p4 = por %p1798_p1, %p54_p0  ;;  %p1813_p6 = por %p128_p3, %p54_p0 }
  0x11   : > { %p135_p7 = scmp.lt.s32.totalorder %s1725_s19, 5  ;;  %s1727_s27 = smov [#allocation5]  }
  0x12   : > { %s2076_s24 = scalar_select %p1808_p4, 1, 0 }
  0x13   : > { %s2077_s25 = scalar_select %p1813_p6, 1, 0 }
  0x14   : > { %p1818_p8 = pnand %p1099_p5, %p135_p7  ;;  %s147_s28 = sshll.u32 %s1727_s27, 4  ;;  %s148_s28 = int_to_ptr.vmem [resolvable:$true] %s147_s28 }
  0x15   : > { %s2080_s1 = sld [smem:[#allocation14_spill]] }
  0x16   : > { %s2078_s26 = scalar_select %p1818_p8, 1, 0 }
  0x17   : > { %p1439_p9 = pneg %p1818_p8 }
  0x19   : > { %p1826_p10 = pnand %p1439_p9, %p1798_p1 }
  0x1b   : > { %s1565_s5 = scalar_lea.hbm %s2080_s1, 3072  ;;  %p1567_p12 = pneg %p1826_p10 }
  0x1c   : > { %p1566_p11 = scmp.ne.s32.totalorder %s2080_s1, %s1565_s5  ;;  %p1572_p3 = scmp.lt.u32.totalorder %s1565_s5, %s2080_s1 }
  0x1e   : > { %p1568_p13 = pnand %p1567_p12, %p1566_p11 }
  0x20   : > { %p1569_p0 = pneg %p1568_p13 }
  0x22   : > { %p1574_p5 = pnand %p1572_p3, %p1569_p0 }
  0x24   : > { %1577 = shalt.err (!%p1574_p5)
}
  0x25   : > { %s1578_s10 = scalar_lea.vmem %s148_s28, 3072  ;;  %p1586_p1 = scmp.lt.s32.totalorder %s148_s28, %s148_s28 }
  0x26   : > { %p1579_p7 = scmp.ne.s32.totalorder %s148_s28, %s1578_s10  ;;  %p1587_p4 = scmp.lt.s32.totalorder %s1578_s10, %s1578_s10 }
  0x28   : > { %p1581_p9 = pnand %p1579_p7, %p1567_p12  ;;  %p1588_p8 = por %p1587_p4, %p1586_p1 }
  0x2a   : > { %p1582_p6 = pneg %p1581_p9 }
  0x2c   : > { %p1589_p2 = pnand %p1588_p8, %p1582_p6 }
  0x2e   : > { %1592 = shalt.err (!%p1589_p2)
}
  0x2f   : > { %s2067_s11 = smov 64   ;;  %s2068_s20 = smov 4  }
  0x30   : > { %1442 = dma.hbm_to_vmem [thread:$0]  (!%p1826_p10), %s2080_s1, 3072, %s148_s28, [#allocation6], %s2067_s11, %s2067_s11, %s2068_s20  }
  0x31   : > { %s29_s30 = sadd.s32 1, %s1717_s17  ;;  %s32_s4 = sadd.s32 1, %s1721_s18 }
  0x32   : > { %p30_p1 = scmp.ge.s32.totalorder %s29_s30, 2  ;;  %s41_s5 = sadd.s32 1, %s1705_s14 }
  0x33   : > { %p48_p2 = scmp.ne.s32.totalorder %s1705_s14, %s1701_s13  ;;  %p49_p4 = scmp.eq.s32.totalorder %s1725_s19, 0 }
  0x34   : > { %s2101_s30 = smov (%p30_p1, %s29_s30), 0  ;;  %s2103_s4 = smov (!%p30_p1, %s32_s4), %s1721_s18 }
  0x35   : > { %2081 = sst [smem:[#allocation12_spill]] %s2101_s30  ;;  %s37_s29 = ssub.s32 %s1717_s17, %s2101_s30 }
  0x36   : > { %p34_p6 = scmp.ge.s32.totalorder %s2103_s4, 2  ;;  %p2082_p8 = scmp.ne.s32.totalorder %s2075_s23, 0 }
  0x37   : > { %p50_p10 = por %p49_p4, %p48_p2  ;;  %p1452_p12 = scmp.lt.s32.totalorder %s1725_s19, 4 }
  0x38   : > { %p1862_p11 = por %p2082_p8, %p48_p2  ;;  %s2105_s4 = smov (%p34_p6, %s2103_s4), 0 }
  0x39   : > { %2084 = sst [smem:[#allocation13_spill]] %s2105_s4  ;;  %s164_s28 = sand.u32 1, %s1705_s14  }
  0x3a   : > { %s1428_s7 = smul.u32 20, %s1717_s17  ;;  %s36_s8 = ssub.s32 %s1721_s18, %s2105_s4 }
  0x3b   : > { %s38_s9 = sor.u32 %s37_s29, %s36_s8  ;;  %s1427_s10 = smul.u32 80, %s164_s28 }
  0x3c   : > { %p39_p13 = scmp.eq.s32.totalorder %s38_s9, 0  ;;  %s1429_s21 = smul.u32 40, %s1721_s18 }
  0x3d   : > { %p1874_p0 = pnand %p1452_p12, %p50_p10  ;;  %s168_s20 = scalar_lea.vmem [#allocation2], %s1427_s10 }
  0x3e   : > { %s1879_s23 = scalar_select %p39_p13, %s1705_s14, %s41_s5  }
  0x3f   : > { %s174_s11 = sadd.s32 %s1429_s21, %s1428_s7  ;;  %s177_s1 = sshll.u32 %s168_s20, 4  ;;  %s1881_s1 = int_to_ptr.vmem [resolvable:$true] %s177_s1 }
  0x40   : > { %s1102_s30 = sshll.u32 %s174_s11, 6  ;;  %s1888_s8 = scalar_lea.sflag [#allocation3], %s164_s28 }
  0x41   : > { %s1886_s29 = scalar_lea.hbm %s2059_s0, %s1102_s30  ;;  %p1595_p5 = pneg %p1874_p0 }
  0x42   : > { %s1593_s9 = scalar_lea.hbm %s1886_s29, 1280  ;;  %s1598_s17 = scalar_lea.hbm %s2059_s0, 5120 }
  0x43   : > { %p1594_p3 = scmp.ne.s32.totalorder %s1886_s29, %s1593_s9  ;;  %p1599_p1 = scmp.lt.u32.totalorder %s1886_s29, %s2059_s0 }
  0x44   : > { %p1600_p2 = scmp.lt.u32.totalorder %s1598_s17, %s1593_s9  ;;  %p1602_p6 = scmp.lt.u32.totalorder %s1593_s9, %s1886_s29 }
  0x45   : > { %p1596_p7 = pnand %p1595_p5, %p1594_p3 }
  0x46   : > { %p1601_p4 = por %p1600_p2, %p1599_p1 }
  0x47   : > { %p1597_p9 = pneg %p1596_p7 }
  0x48   : > { %p1603_p8 = por %p1602_p6, %p1601_p4 }
  0x4a   : > { %p1604_p10 = pnand %p1603_p8, %p1597_p9 }
  0x4c   : > { %1607 = shalt.err (!%p1604_p10)
}
  0x4d   : > { %s1608_s5 = scalar_lea.vmem %s1881_s1, 1280  ;;  %s1730_s28 = smov [#allocation2]  }
  0x4e   : > { %p1609_p12 = scmp.ne.s32.totalorder %s1881_s1, %s1608_s5  ;;  %s1613_s7 = sshll.u32 %s1730_s28, 4  ;;  %s1614_s7 = int_to_ptr.vmem [resolvable:$false] %s1613_s7 }
  0x4f   : > { %s1615_s10 = scalar_lea.vmem %s1614_s7, 2560  ;;  %p1616_p7 = scmp.lt.s32.totalorder %s1881_s1, %s1614_s7 }
  0x50   : > { %p1611_p13 = pnand %p1609_p12, %p1595_p5  ;;  %p1617_p1 = scmp.lt.s32.totalorder %s1615_s10, %s1608_s5 }
  0x52   : > { %p1612_p3 = pneg %p1611_p13  ;;  %p1618_p2 = por %p1617_p1, %p1616_p7 }
  0x54   : > { %p1619_p4 = pnand %p1618_p2, %p1612_p3 }
  0x56   : > { %1622 = shalt.err (!%p1619_p4)
}
  0x57   : > { %s2086_s21 = smov 4   ;;  %s2087_s9 = smov 64  }
  0x58   : > { %1446 = dma.hbm_to_vmem [thread:$0]  (!%p1874_p0), %s1886_s29, 1280, %s1881_s1, %s1888_s8, %s2087_s9, %s2087_s9, %s2086_s21  }
  0x59   : > { %p2088_p5 = scmp.ne.s32.totalorder %s2078_s26, 0 }
  0x5a   : > { %s1922_s11 = sand.u32 (!%p2088_p5), 1, %s1701_s13   ;;  %p2089_p9 = scmp.ne.s32.totalorder (!%p2088_p5), %s2076_s24, 0 }
  0x5b   : > { %189 = sbr.rel (%p2088_p5) target bundleno = 414 (0x19e), region = 32  ;;  %s192_s17 = scalar_lea.sflag (!%p2088_p5), [#allocation3], %s1922_s11 }
  0x5c   : > { %s1430_s20 = smul.u32 (!%p2088_p5), 80, %s1922_s11 }
  0x5e   : > { %s1926_s30 = scalar_lea.vmem (!%p2088_p5), [#allocation2], %s1430_s20 }
  0x62   : > { %1684 = dma.done.wait (%p2089_p9), %s192_s17, 1280  }
  0x63   : > { %1686 = vsyncadd (%p2089_p9), %s192_s17, 4294966016  ;;  %p2090_p0 = scmp.ne.s32.totalorder %s2074_s22, 0 }
  0x65   : > { %1688 = dma.done.wait (%p2090_p0), [#allocation6], 3072  }
  0x66   : > { %1690 = vsyncadd (%p2090_p0), [#allocation6], 4294964224  ;;  %v1524_v0 = vld [vmem:[#allocation5 + $0x40] sm:$0xff]   ;;  %v1526_v2 = vld [vmem:[#allocation5 + $0x48] sm:$0xff]   ;;  %s1105_s24 = sshll.u32 %s1922_s11, 6  ;;  %s1187_s26 = sshll.u32 %s1709_s15, 4 }
  0x67   : > { %v1525_v1 = vld [vmem:[#allocation5] sm:$0xff]   ;;  %1283 = vmatprep.subr.bf16.mxu1 %v1524_v0  ;;  %v1527_v3 = vld [vmem:[#allocation5 + $0x8] sm:$0xff]   ;;  %v1528_v4 = vld [vmem:[#allocation5 + $0x50] sm:$0xff]   ;;  %s1167_s27 = sshll.u32 %s1713_s16, 5  ;;  %s1978_s29 = scalar_lea.vmem [#allocation7], %s1105_s24 }
  0x68   : > { %1315 = vmatprep.subr.bf16.mxu0 %v1525_v1  ;;  %1284 = vmatpush3.bf16.msra.mxu1 %v1524_v0  ;;  %v1529_v5 = vld [vmem:[#allocation5 + $0x10] sm:$0xff]   ;;  %v1530_v6 = vld [vmem:[#allocation5 + $0x58] sm:$0xff]   ;;  %v1532_v8 = vld [vmem:[#allocation5 + $0x60] sm:$0xff]   ;;  %s994_s15 = sadd.s32 %s1187_s26, %s1167_s27  ;;  %s997_s8 = sshll.u32 %s1978_s29, 4  ;;  %s2001_s8 = int_to_ptr.vmem [resolvable:$true] %s997_s8 }
  0x69   : > { %1316 = vmatpush3.bf16.msra.mxu0 %v1525_v1  ;;  %1285 = vmatprep.subr.bf16.mxu1 %v1526_v2  ;;  %v1531_v7 = vld [vmem:[#allocation5 + $0x18] sm:$0xff]   ;;  %v1533_v9 = vld [vmem:[#allocation5 + $0x20] sm:$0xff]   ;;  %v1534_v10 = vld [vmem:[#allocation5 + $0x68] sm:$0xff]   ;;  %s1168_s16 = sshll.u32 %s994_s15, 6  ;;  %s981_s7 = scalar_lea.sflag [#allocation4], %s1922_s11 }
  0x6a   : > { %1317 = vmatprep.subr.bf16.mxu0 %v1527_v3  ;;  %v1535_v11 = vld [vmem:[#allocation5 + $0x28] sm:$0xff]   ;;  %v1541_v13 = vld [vmem:[%s1926_s30] sm:$0xff]   ;;  %v1538_v16 = vld [vmem:[#allocation5 + $0x78] sm:$0xff]   ;;  %s1999_s28 = scalar_lea.hbm %s2062_s3, %s1168_s16  ;;  %s1623_s10 = scalar_lea.vmem %s2001_s8, 1024 }
  0x6b   : > { %v1540_v12 = vld [vmem:[%s1926_s30 + $0x8] sm:$0xff]   ;;  %1331 = vmatprep.mubr.bf16.mxu0 %v1541_v13  ;;  %v1536_v14 = vld [vmem:[#allocation5 + $0x70] sm:$0xff]   ;;  %v1543_v18 = vld [vmem:[#allocation5 + $0x80] sm:$0xff]   ;;  %p1624_p6 = scmp.ne.s32.totalorder %s2001_s8, %s1623_s10  ;;  %s1731_s21 = smov [#allocation7]  }
  0x6c   : > { %1286 = vmatpush3.bf16.msra.mxu1 %v1526_v2  ;;  %1299 = vmatprep.mubr.bf16.mxu1 %v1540_v12  ;;  %v1537_v15 = vld [vmem:[#allocation5 + $0x30] sm:$0xff]   ;;  %v1539_v17 = vld [vmem:[#allocation5 + $0x38] sm:$0xff]   ;;  %v1544_v20 = vld [vmem:[#allocation5 + $0x88] sm:$0xff]   ;;  %s1627_s9 = sshll.u32 %s1731_s21, 4  ;;  %s1628_s9 = int_to_ptr.vmem [resolvable:$false] %s1627_s9 }
  0x6d   : > { %1318 = vmatpush3.bf16.msra.mxu0 %v1527_v3  ;;  %1287 = vmatprep.subr.bf16.mxu1 %v1528_v4  ;;  %v1542_v19 = vld [vmem:[%s1926_s30 + $0x10] sm:$0xff]   ;;  %v1545_v21 = vld [vmem:[%s1926_s30 + $0x18] sm:$0xff]   ;;  %v1546_v23 = vld [vmem:[%s1926_s30 + $0x20] sm:$0xff]   ;;  %p1625_p8 = pnand %p1624_p6, %p1862_p11  ;;  %s1629_s20 = scalar_lea.vmem %s1628_s9, 2048 }
  0x6e   : > { %1319 = vmatprep.subr.bf16.mxu0 %v1529_v5  ;;  %v1547_v22 = vld [vmem:[#allocation5 + $0x90] sm:$0xff]   ;;  %v1548_v24 = vld [vmem:[#allocation5 + $0x98] sm:$0xff]   ;;  %v1551_v26 = vld [vmem:[#allocation5 + $0xa0] sm:$0xff]   ;;  %p1630_p12 = scmp.lt.s32.totalorder %s2001_s8, %s1628_s9  ;;  %p1631_p13 = scmp.lt.s32.totalorder %s1629_s20, %s1623_s10 }
  0x6f   : > { %v1549_v25 = vld [vmem:[%s1926_s30 + $0x28] sm:$0xff]   ;;  %v1550_v27 = vld [vmem:[%s1926_s30 + $0x30] sm:$0xff]   ;;  %v1553_v29 = vld [vmem:[%s1926_s30 + $0x38] sm:$0xff]   ;;  %p1626_p10 = pneg %p1625_p8 }
  0x70   : > { %1288 = vmatpush3.bf16.msra.mxu1 %v1528_v4  ;;  %v1552_v28 = vld [vmem:[#allocation5 + $0xa8] sm:$0xff]   ;;  %v1555_v30 = vld [vmem:[#allocation5 + $0xb0] sm:$0xff]   ;;  %v1556_v32 = vld [vmem:[#allocation5 + $0xb8] sm:$0xff]   ;;  %p1632_p3 = por %p1631_p13, %p1630_p12 }
  0x71   : > { %1320 = vmatpush3.bf16.msra.mxu0 %v1529_v5  ;;  %1289 = vmatprep.subr.bf16.mxu1 %v1530_v6  ;;  %v1554_v31 = vld [vmem:[%s1926_s30 + $0x40] sm:$0xff]   ;;  %v1557_v33 = vld [vmem:[%s1926_s30 + $0x10] sm:$0xff]   ;;  %v1560_v35 = vld [vmem:[%s1926_s30 + $0x38] sm:$0xff]  }
  0x72   : > { %1321 = vmatprep.subr.bf16.mxu0 %v1531_v7  ;;  %v1558_v34 = vld [vmem:[%s1926_s30 + $0x30] sm:$0xff]   ;;  %v1559_v36 = vld [vmem:[%s1926_s30 + $0x18] sm:$0xff]   ;;  %v1562_v37 = vld [vmem:[%s1926_s30 + $0x40] sm:$0xff]   ;;  %p1633_p7 = pnand %p1632_p3, %p1626_p10 }
  0x73   : > { %v1561_v38 = vld [vmem:[%s1926_s30 + $0x20] sm:$0xff]   ;;  %v1564_v39 = vld [vmem:[%s1926_s30 + $0x48] sm:$0xff]  }
  0x74   : > { %1290 = vmatpush3.bf16.msra.mxu1 %v1530_v6  ;;  %v1563_v40 = vld [vmem:[%s1926_s30 + $0x28] sm:$0xff]  }
  0x75   : > { %1322 = vmatpush3.bf16.msra.mxu0 %v1531_v7  ;;  %1291 = vmatprep.subr.bf16.mxu1 %v1532_v8 }
  0x76   : > { %1323 = vmatprep.subr.bf16.mxu0 %v1533_v9 }
  0x78   : > { %1292 = vmatpush3.bf16.msra.mxu1 %v1532_v8 }
  0x79   : > { %1324 = vmatpush3.bf16.msra.mxu0 %v1533_v9  ;;  %1293 = vmatprep.subr.bf16.mxu1 %v1534_v10  ;;  %v1964_v9 = vld [vmem:[%s2061_s2] ss:$0 sm:$0xff] }
  0x7a   : > { %1325 = vmatprep.subr.bf16.mxu0 %v1535_v11 }
  0x7c   : > { %1294 = vmatpush3.bf16.msra.mxu1 %v1534_v10 }
  0x7d   : > { %1326 = vmatpush3.bf16.msra.mxu0 %v1535_v11  ;;  %1295 = vmatprep.subr.bf16.mxu1 %v1536_v14 }
  0x7e   : > { %1327 = vmatprep.subr.bf16.mxu0 %v1537_v15 }
  0x80   : > { %1296 = vmatpush3.bf16.msra.mxu1 %v1536_v14 }
  0x81   : > { %1328 = vmatpush3.bf16.msra.mxu0 %v1537_v15  ;;  %1297 = vmatprep.subr.bf16.mxu1 %v1538_v16 }
  0x82   : > { %1329 = vmatprep.subr.bf16.mxu0 %v1539_v17 }
  0x84   : > { %1298 = vmatpush3.bf16.msra.mxu1 %v1538_v16 }
  0x85   : > { %1330 = vmatpush3.bf16.msra.mxu0 %v1539_v17  ;;  %1379 = vmatprep.subr.bf16.mxu1 %v1543_v18 }
  0x86   : > { %1347 = vmatprep.subr.bf16.mxu0 %v1543_v18 }
  0x87   : > { %1300 = vmatmul.mubr.bf16.vlgmr.msra.gmra.mrb[0].mxu1 %v1542_v19 }
  0x88   : > { %1332 = vmatmul.mubr.bf16.vlgmr.msra.gmra.mrb[0].mxu0 %v1540_v12  ;;  %1387 = vmatpush3.bf16.msra.mxu1 %v1543_v18 }
  0x89   : > { %1348 = vmatpush3.bf16.msra.mxu0 %v1543_v18  ;;  %1380 = vmatprep.subr.bf16.mxu1 %v1544_v20 }
  0x8a   : > { %1349 = vmatprep.subr.bf16.mxu0 %v1544_v20  ;;  %1303 = vmatprep.mubr.bf16.mxu1 %v1545_v21 }
  0x8b   : > { %1335 = vmatprep.mubr.bf16.mxu0 %v1542_v19 }
  0x8c   : > { %1388 = vmatpush3.bf16.msra.mxu1 %v1544_v20 }
  0x8d   : > { %1350 = vmatpush3.bf16.msra.mxu0 %v1544_v20  ;;  %1381 = vmatprep.subr.bf16.mxu1 %v1547_v22 }
  0x8e   : > { %1351 = vmatprep.subr.bf16.mxu0 %v1547_v22 }
  0x8f   : > { %1304 = vmatmul.mubr.bf16.gmra.mrb[4].mxu1 %v1546_v23 }
  0x90   : > { %1336 = vmatmul.mubr.bf16.gmra.mrb[4].mxu0 %v1545_v21  ;;  %1389 = vmatpush3.bf16.msra.mxu1 %v1547_v22 }
  0x91   : > { %1352 = vmatpush3.bf16.msra.mxu0 %v1547_v22  ;;  %1382 = vmatprep.subr.bf16.mxu1 %v1548_v24 }
  0x92   : > { %1353 = vmatprep.subr.bf16.mxu0 %v1548_v24  ;;  %1307 = vmatprep.mubr.bf16.mxu1 %v1549_v25 }
  0x93   : > { %1339 = vmatprep.mubr.bf16.mxu0 %v1546_v23 }
  0x94   : > { %1390 = vmatpush3.bf16.msra.mxu1 %v1548_v24 }
  0x95   : > { %1354 = vmatpush3.bf16.msra.mxu0 %v1548_v24  ;;  %1383 = vmatprep.subr.bf16.mxu1 %v1551_v26 }
  0x96   : > { %1355 = vmatprep.subr.bf16.mxu0 %v1551_v26 }
  0x97   : > { %1308 = vmatmul.mubr.bf16.gmra.mrb[8].mxu1 %v1550_v27 }
  0x98   : > { %1340 = vmatmul.mubr.bf16.gmra.mrb[8].mxu0 %v1549_v25  ;;  %1391 = vmatpush3.bf16.msra.mxu1 %v1551_v26 }
  0x99   : > { %1356 = vmatpush3.bf16.msra.mxu0 %v1551_v26  ;;  %1384 = vmatprep.subr.bf16.mxu1 %v1552_v28 }
  0x9a   : > { %1357 = vmatprep.subr.bf16.mxu0 %v1552_v28  ;;  %1311 = vmatprep.mubr.bf16.mxu1 %v1553_v29 }
  0x9b   : > { %1343 = vmatprep.mubr.bf16.mxu0 %v1550_v27 }
  0x9c   : > { %1392 = vmatpush3.bf16.msra.mxu1 %v1552_v28 }
  0x9d   : > { %1358 = vmatpush3.bf16.msra.mxu0 %v1552_v28  ;;  %1385 = vmatprep.subr.bf16.mxu1 %v1555_v30 }
  0x9e   : > { %1359 = vmatprep.subr.bf16.mxu0 %v1555_v30 }
  0x9f   : > { %1312 = vmatmul.mubr.bf16.gmra.mrb[12].mxu1 %v1554_v31 }
  0xa0   : > { %1344 = vmatmul.mubr.bf16.gmra.mrb[12].mxu0 %v1553_v29  ;;  %1393 = vmatpush3.bf16.msra.mxu1 %v1555_v30 }
  0xa1   : > { %1360 = vmatpush3.bf16.msra.mxu0 %v1555_v30  ;;  %1386 = vmatprep.subr.bf16.mxu1 %v1556_v32 }
  0xa2   : > { %1361 = vmatprep.subr.bf16.mxu0 %v1556_v32  ;;  %1363 = vmatprep.mubr.bf16.mxu0 %v1557_v33 }
  0xa3   : > { %1371 = vmatprep.mubr.bf16.mxu1 %v1558_v34 }
  0xa4   : > { %1394 = vmatpush3.bf16.msra.mxu1 %v1556_v32 }
  0xa5   : > { %1362 = vmatpush3.bf16.msra.mxu0 %v1556_v32 }
  0xa7   : > { %1372 = vmatmul.mubr.bf16.vlgmr.msra.gmra.mrb[16].mxu1 %v1560_v35 }
  0xa8   : > { %1364 = vmatmul.mubr.bf16.vlgmr.msra.gmra.mrb[0].mxu0 %v1559_v36  ;;  %1375 = vmatprep.mubr.bf16.mxu1 %v1562_v37 }
  0xa9   : > { %1367 = vmatprep.mubr.bf16.mxu0 %v1561_v38 }
  0xaf   : > { %1376 = vmatmul.mubr.bf16.gmra.mrb[20].mxu1 %v1564_v39 }
  0xb0   : > { %1368 = vmatmul.mubr.bf16.gmra.mrb[4].mxu0 %v1563_v40 }
 0x15a   : > { %v1301_v41 = vpop.f32.mrb[0].mxu1 }
 0x15b   : > { %v405_v42 = vpop.f32.mrb[1].mxu1 }
 0x15c   : > { %v1302_v43 = vpop.f32.mrb[2].mxu1 }
 0x15d   : > { %v408_v44 = vpop.f32.mrb[3].mxu1 }
 0x162   : > { %v1953_v45 = vpop.f32.mrb[4].mxu1 }
 0x163   : > { %v1955_v46 = vpop.f32.mrb[5].mxu1 }
 0x164   : > { %v1957_v47 = vpop.f32.mrb[6].mxu1 }
 0x165   : > { %v1959_v48 = vpop.f32.mrb[7].mxu1 }
 0x16a   : > { %v1309_v49 = vpop.f32.mrb[8].mxu1 }
 0x16b   : > { %v1341_v50 = vpop.f32.mrb[8].mxu0  ;;  %v437_v51 = vpop.f32.mrb[9].mxu1 }
 0x16c   : > { %v597_v52 = vadd.f32 %v1341_v50, %v1309_v49  ;;  %v588_v53 = vpop.f32.mrb[9].mxu0  ;;  %v1310_v54 = vpop.f32.mrb[10].mxu1 }
 0x16d   : > { %v589_v55 = vadd.f32 %v588_v53, %v437_v51  ;;  %v1342_v56 = vpop.f32.mrb[10].mxu0  ;;  %v440_v57 = vpop.f32.mrb[11].mxu1 }
 0x16e   : > { %v600_v58 = vadd.f32 %v1342_v56, %v1310_v54  ;;  %v591_v59 = vpop.f32.mrb[11].mxu0 }
 0x16f   : > { %v592_v60 = vadd.f32 %v591_v59, %v440_v57 }
 0x172   : > { %v1313_v61 = vpop.f32.mrb[12].mxu1 }
 0x173   : > { %v1345_v62 = vpop.f32.mrb[12].mxu0  ;;  %v453_v63 = vpop.f32.mrb[13].mxu1 }
 0x174   : > { %v613_v0 = vadd.f32 %v1345_v62, %v1313_v61  ;;  %v604_v1 = vpop.f32.mrb[13].mxu0  ;;  %v1314_v2 = vpop.f32.mrb[14].mxu1 }
 0x175   : > { %v605_v3 = vadd.f32 %v604_v1, %v453_v63  ;;  %v1346_v4 = vpop.f32.mrb[14].mxu0  ;;  %v456_v5 = vpop.f32.mrb[15].mxu1 }
 0x176   : > { %v616_v6 = vadd.f32 %v1346_v4, %v1314_v2  ;;  %v607_v7 = vpop.f32.mrb[15].mxu0 }
 0x177   : > { %v608_v8 = vadd.f32 %v607_v7, %v456_v5 }
 0x17a   : > { %v1373_v10 = vpop.f32.mrb[16].mxu1 }
 0x17b   : > { %v1365_v11 = vpop.f32.mrb[0].mxu0  ;;  %v855_v12 = vadd.f32 %v1373_v10, %v597_v52  ;;  %v814_v13 = vpop.f32.mrb[17].mxu1 }
 0x17c   : > { %v1395_v14 = vadd.f32 %v1365_v11, %v1301_v41  ;;  %v782_v15 = vpop.f32.mrb[1].mxu0  ;;  %v853_v16 = vadd.f32 %v814_v13, %v589_v55  ;;  %v1374_v17 = vpop.f32.mrb[18].mxu1 }
 0x17d   : > { %v878_v18 = vadd.f32 %v1964_v9, %v855_v12  ;;  %v1396_v19 = vadd.f32 %v782_v15, %v405_v42  ;;  %v1366_v20 = vpop.f32.mrb[2].mxu0  ;;  %v856_v21 = vadd.f32 %v1374_v17, %v600_v58  ;;  %v817_v22 = vpop.f32.mrb[19].mxu1 }
 0x17e   : > { %v870_v23 = vadd.f32 %v1395_v14, %v1964_v9  ;;  %v876_v24 = vadd.f32 %v1964_v9, %v853_v16  ;;  %v1397_v25 = vadd.f32 %v1366_v20, %v1302_v43  ;;  %v785_v26 = vpop.f32.mrb[3].mxu0  ;;  %v854_v27 = vadd.f32 %v817_v22, %v592_v60 }
 0x17f   : > { %v868_v28 = vadd.f32 %v1396_v19, %v1964_v9  ;;  %v879_v29 = vadd.f32 %v1964_v9, %v856_v21  ;;  %v1398_v30 = vadd.f32 %v785_v26, %v408_v44  ;;  %v894_v33 = vmax.f32 %v878_v18, 0.0 }
 0x180   : > { %v871_v31 = vadd.f32 %v1397_v25, %v1964_v9  ;;  %v877_v32 = vadd.f32 %v1964_v9, %v854_v27  ;;  %v886_v36 = vmax.f32 %v870_v23, 0.0  ;;  %v892_v37 = vmax.f32 %v876_v24, 0.0 }
 0x181   : > { %v895_v34 = vmax.f32 %v879_v29, 0.0  ;;  %v869_v35 = vadd.f32 %v1398_v30, %v1964_v9  ;;  %v884_v41 = vmax.f32 %v868_v28, 0.0 }
 0x182   : > { %v887_v38 = vmax.f32 %v871_v31, 0.0  ;;  %v893_v39 = vmax.f32 %v877_v32, 0.0  ;;  %v1377_v40 = vpop.f32.mrb[20].mxu1 }
 0x183   : > { %v1216_v42 = vpack.c.bf16 %v895_v34, %v894_v33  ;;  %v885_v43 = vmax.f32 %v869_v35, 0.0  ;;  %v1369_v49 = vpop.f32.mrb[4].mxu0  ;;  %v859_v44 = vadd.f32 %v1377_v40, %v613_v0  ;;  %v830_v50 = vpop.f32.mrb[21].mxu1 }
 0x184   : > { %v1196_v51 = vpack.c.bf16 %v887_v38, %v886_v36  ;;  %v1211_v52 = vpack.c.bf16 %v893_v39, %v892_v37  ;;  %v1399_v53 = vadd.f32 %v1369_v49, %v1953_v45  ;;  %v798_v54 = vpop.f32.mrb[5].mxu0  ;;  %v857_v55 = vadd.f32 %v830_v50, %v605_v3  ;;  %v1378_v56 = vpop.f32.mrb[22].mxu1 }
 0x185   : > { %1232 = vst [vmem:[%s1978_s29 + $0x28] sm:$0xff] %v1216_v42   ;;  %v1191_v57 = vpack.c.bf16 %v885_v43, %v884_v41  ;;  %v882_v58 = vadd.f32 %v1964_v9, %v859_v44  ;;  %v1400_v59 = vadd.f32 %v798_v54, %v1955_v46  ;;  %v1370_v60 = vpop.f32.mrb[6].mxu0  ;;  %v860_v61 = vadd.f32 %v1378_v56, %v616_v6  ;;  %v833_v62 = vpop.f32.mrb[23].mxu1 }
 0x186   : > { %1228 = vst [vmem:[%s1978_s29 + $0x8] sm:$0xff] %v1196_v51   ;;  %1231 = vst [vmem:[%s1978_s29 + $0x20] sm:$0xff] %v1211_v52   ;;  %v874_v45 = vadd.f32 %v1399_v53, %v1964_v9  ;;  %v880_v63 = vadd.f32 %v1964_v9, %v857_v55  ;;  %v1401_v0 = vadd.f32 %v1370_v60, %v1957_v47  ;;  %v801_v1 = vpop.f32.mrb[7].mxu0 }
 0x187   : > { %v858_v2 = vadd.f32 %v833_v62, %v608_v8  ;;  %1192 = vst [vmem:[%s1978_s29] sm:$0xff] %v1191_v57   ;;  %v872_v3 = vadd.f32 %v1400_v59, %v1964_v9  ;;  %v883_v46 = vadd.f32 %v1964_v9, %v860_v61  ;;  %v1402_v4 = vadd.f32 %v801_v1, %v1959_v48 }
 0x188   : > { %v875_v5 = vadd.f32 %v1401_v0, %v1964_v9  ;;  %v898_v7 = vmax.f32 %v882_v58, 0.0  ;;  %v890_v47 = vmax.f32 %v874_v45, 0.0  ;;  %v896_v8 = vmax.f32 %v880_v63, 0.0 }
 0x189   : > { %v881_v6 = vadd.f32 %v1964_v9, %v858_v2  ;;  %v899_v10 = vmax.f32 %v883_v46, 0.0  ;;  %v873_v11 = vadd.f32 %v1402_v4, %v1964_v9  ;;  %v888_v48 = vmax.f32 %v872_v3, 0.0 }
 0x18a   : > { %v891_v12 = vmax.f32 %v875_v5, 0.0 }
 0x18b   : > { %v897_v13 = vmax.f32 %v881_v6, 0.0  ;;  %v1226_v14 = vpack.c.bf16 %v899_v10, %v898_v7  ;;  %v889_v15 = vmax.f32 %v873_v11, 0.0 }
 0x18c   : > { %v1206_v16 = vpack.c.bf16 %v891_v12, %v890_v47 }
 0x18d   : > { %v1221_v17 = vpack.c.bf16 %v897_v13, %v896_v8  ;;  %1234 = vst [vmem:[%s1978_s29 + $0x38] sm:$0xff] %v1226_v14   ;;  %v1201_v9 = vpack.c.bf16 %v889_v15, %v888_v48 }
 0x18e   : > { %1230 = vst [vmem:[%s1978_s29 + $0x18] sm:$0xff] %v1206_v16  }
 0x18f   : > { %1233 = vst [vmem:[%s1978_s29 + $0x30] sm:$0xff] %v1221_v17   ;;  %1229 = vst [vmem:[%s1978_s29 + $0x10] sm:$0xff] %v1201_v9  }
 0x190   : > { %1636 = shalt.err (!%p1633_p7)
}
 0x191   : > { %s1637_s17 = scalar_lea.hbm %s1999_s28, 1024  ;;  %s1641_s22 = scalar_lea.hbm %s2062_s3, 4096 }
 0x192   : > { %p1638_p1 = scmp.ne.s32.totalorder %s1999_s28, %s1637_s17  ;;  %p1642_p5 = scmp.lt.u32.totalorder %s1999_s28, %s2062_s3 }
 0x193   : > { %p1643_p9 = scmp.lt.u32.totalorder %s1641_s22, %s1637_s17  ;;  %p1645_p6 = scmp.lt.u32.totalorder %s1637_s17, %s1999_s28 }
 0x194   : > { %p1639_p2 = pnand %p1638_p1, %p1862_p11 }
 0x195   : > { %p1644_p0 = por %p1643_p9, %p1642_p5 }
 0x196   : > { %p1640_p4 = pneg %p1639_p2 }
 0x197   : > { %p1646_p8 = por %p1645_p6, %p1644_p0 }
 0x199   : > { %p1647_p10 = pnand %p1646_p8, %p1640_p4 }
 0x19b   : > { %1650 = shalt.err (!%p1647_p10)
}
 0x19c   : > { %s1732_s27 = smov 64   ;;  %s1733_s29 = smov 4  }
 0x19d   : > { %1437 = dma.vmem_to_hbm [thread:$0]  (%p1862_p11), %s2001_s8, 1024, %s1999_s28, %s981_s7, %s1732_s27, %s1732_s27, %s1733_s29  }
 0x19e PF: > { %p1454_p12 = scmp.ge.s32.totalorder %s1725_s19, 2  ;;  %s1012_s15 = sand.u32 1, %s1697_s12  }
 0x19f   : > { %p2091_p13 = scmp.ne.s32.totalorder %s2077_s25, 0  ;;  %s1013_s16 = scalar_lea.sflag [#allocation4], %s1012_s15 }
 0x1a1   : > { %p1448_p3 = pnand %p1454_p12, %p2091_p13 }
 0x1a3   : > { %1692 = dma.done.wait (!%p1448_p3), %s1013_s16, 1024  }
 0x1a4   : > { %1694 = vsyncadd (!%p1448_p3), %s1013_s16, 4294966272  ;;  %s20_s19 = sadd.s32 1, %s1725_s19   ;;  %s2092_s15 = sld [smem:[#allocation11_spill]] }
 0x1a5   : > { %p17_p7 = scmp.ge.s32.totalorder %s20_s19, 6   ;;  %s2093_s17 = sld [smem:[#allocation12_spill]] }
 0x1a6   : > { %s2094_s6 = sld [smem:[#allocation13_spill]]  ;;  %s2095_s12 = smov %s1701_s13 }
 0x1a7   : > { %s2096_s13 = smov %s1705_s14  ;;  %s2097_s14 = smov %s1879_s23 }
 0x1a8   : > { %s2098_s16 = smov %s1721_s18  ;;  %19 = sbr.rel (!%p17_p7) target bundleno = 10 (0xa), region = 83 }
 0x1ac   : > { %s2099_s18 = smov %s2094_s6 }
 0x1af   :  { %1018 = vsyncpa [#allocation3], 1 }
 0x1b0   :  { %1020 = vsyncpa [#allocation3 + $0x1], 1 }
 0x1b1   :  { %1021 = vsyncpa [#allocation6], 1 }
 0x1b2   :  { %1022 = vsyncpa [#allocation4], 1 }
 0x1b3   :  { %1024 = vsyncpa [#allocation4 + $0x1], 1 }

</bundles_post_ra>
